<compile_context>
chip_gen: v5e
topology: v5e:2x2
jax: 0.10.0
libtpu: 0.0.40
codegen_flags: <defaults>
</compile_context>

<pallas_src>
import jax
import jax.numpy as jnp
from jax.experimental import pallas as pl
from jax.experimental.pallas import tpu as pltpu


def _round_up(n, m):
    return ((n + m - 1) // m) * m


def linear_kernel(params_ref, x_ref, o_ref):
    # params_ref: SMEM f32[3] = [w0, w1, b]
    # x_ref:      VMEM (2, tile_r, 128) feature-major, sublane/lane-dense slab
    # o_ref:      VMEM (tile_r, 128) dense output slab
    w0 = params_ref[0]
    w1 = params_ref[1]
    b = params_ref[2]
    x0 = x_ref[0].astype(jnp.float32)          # (tile_r, 128)
    x1 = x_ref[1].astype(jnp.float32)          # (tile_r, 128)
    y = w0 * x0 + w1 * x1 + b                  # pure VPU, dense vregs
    o_ref[...] = y.astype(o_ref.dtype)


def _choose_tile_r(R, *, max_tile_r=4096, min_steps=4):
    """Rows-of-128 per grid step.

    - multiple of 8 (sublane-dense blocks) unless the whole array is smaller,
    - >= min_steps grid steps when possible (v7x: shard the 'parallel' axis
      over both TensorCores and still pipeline within each),
    - capped at 4096 (~4 MiB of x per step; ~12 MiB double-buffered VMEM).
    """
    if R <= 8:
        return R                               # block dim == full array dim
    t = _round_up(pl.cdiv(R, min_steps), 8)
    return min(max_tile_r, t)


def lrm_forward(x, weight, bias, *, max_tile_r=4096):
    """Equivalent of LRM.forward: nn.Linear(2, 1) applied to x [B, 2].

    weight: [1, 2] (PyTorch nn.Linear convention), bias: [1].
    Returns y = x @ W^T + b with shape [B, 1].
    """
    B, F_in = x.shape
    F_out, F_in_w = weight.shape
    assert F_in == 2 and F_in_w == 2 and F_out == 1

    # Pack the three scalar params; they live in SMEM inside the kernel.
    params = jnp.concatenate(
        [weight.reshape(-1), bias.reshape(-1)]
    ).astype(jnp.float32)                      # [w0, w1, b]

    # Feature-major, (sublane, lane)-dense layout: (2, R, 128).
    # transpose + tiny pad (<=127 samples) + reshape fuse to one copy under jit.
    R = pl.cdiv(B, 128)
    B_pad = R * 128
    xT = x.T                                   # (2, B)
    if B_pad != B:
        xT = jnp.pad(xT, ((0, 0), (0, B_pad - B)))
    x3 = xT.reshape(2, R, 128)

    tile_r = _choose_tile_r(R, max_tile_r=max_tile_r)
    grid = (pl.cdiv(R, tile_r),)               # ragged last block -> masked writes

    out = pl.pallas_call(
        linear_kernel,
        out_shape=jax.ShapeDtypeStruct((R, 128), x.dtype),
        grid=grid,
        in_specs=[
            pl.BlockSpec(memory_space=pltpu.MemorySpace.SMEM),     # params -> SMEM
            pl.BlockSpec((2, tile_r, 128), lambda i: (0, i, 0)),   # dense x slab
        ],
        out_specs=pl.BlockSpec((tile_r, 128), lambda i: (i, 0)),   # dense output
        compiler_params=pltpu.CompilerParams(
            dimension_semantics=("parallel",),   # v7x: shard batch over 2 TCs
            vmem_limit_bytes=32 * 1024 * 1024,   # safe on v5e/v6e/v7x
        ),
        cost_estimate=pl.CostEstimate(
            flops=4 * B_pad, transcendentals=0, bytes_accessed=12 * B_pad
        ),
    )(params, x3)

    # (R, 128) -> [B, 1]; free when B % 128 == 0, tiny slice otherwise.
    return out.reshape(-1)[:B].reshape(B, F_out)


if __name__ == "__main__":
    key = jax.random.PRNGKey(0)
    kx, kw, kb = jax.random.split(key, 3)

    B, F_in, F_out = 8, 2, 1
    x = jax.random.normal(kx, (B, F_in), dtype=jnp.float32)
    # Deterministic "Linear(2, 1)" parameters (PyTorch shapes: W [1,2], b [1]).
    weight = jax.random.normal(kw, (F_out, F_in), dtype=jnp.float32) * 0.5
    bias = jax.random.normal(kb, (F_out,), dtype=jnp.float32) * 0.1

    lrm = jax.jit(lrm_forward)
    y = lrm(x, weight, bias)
    jax.block_until_ready(y)
    y_ref = x @ weight.T + bias
    assert y.shape == (B, F_out)
    assert jnp.allclose(y, y_ref, atol=1e-5, rtol=1e-5)

    # Also exercise a multi-step grid with a ragged last block (B % 128 != 0).
    B2 = 2500
    x2 = jax.random.normal(kx, (B2, F_in), dtype=jnp.float32)
    y2 = jax.jit(lrm_forward)(x2, weight, bias)
    jax.block_until_ready(y2)
    assert jnp.allclose(y2, x2 @ weight.T + bias, atol=1e-5, rtol=1e-5)

    print("KERNEL_OK")
</pallas_src>

<mosaic_0001>
module attributes {stable_mosaic.version = 11 : i64} {
  func.func @linear_kernel(%arg0: i32, %arg1: memref<3xf32, #tpu.memory_space<smem>>, %arg2: memref<2x1x128xf32, #tpu.memory_space<vmem>>, %arg3: memref<1x128xf32, #tpu.memory_space<vmem>>) attributes {dimension_semantics = [#tpu.dimension_semantics<parallel>], iteration_bounds = array<i64: 1>, scalar_prefetch = 0 : i64, scratch_operands = 0 : i64, tpu.core_type = #tpu.core_type<tc>, window_params = [{transform_indices = @transform_0, window_bounds = array<i64: 3>}, {transform_indices = @transform_1, window_bounds = array<i64: 2, 1, 128>}, {transform_indices = @transform_2, window_bounds = array<i64: 1, 128>}]} {
    %c0 = arith.constant 0 : index
    %0 = memref.load %arg1[%c0] : memref<3xf32, #tpu.memory_space<smem>>
    %c1 = arith.constant 1 : index
    %1 = memref.load %arg1[%c1] : memref<3xf32, #tpu.memory_space<smem>>
    %c2 = arith.constant 2 : index
    %2 = memref.load %arg1[%c2] : memref<3xf32, #tpu.memory_space<smem>>
    %c0_0 = arith.constant 0 : index
    %c0_1 = arith.constant 0 : index
    %c0_2 = arith.constant 0 : index
    %3 = vector.load %arg2[%c0_0, %c0_1, %c0_2] : memref<2x1x128xf32, #tpu.memory_space<vmem>>, vector<1x1x128xf32>
    %4 = vector.shape_cast %3 : vector<1x1x128xf32> to vector<1x128xf32>
    %c1_3 = arith.constant 1 : index
    %c0_4 = arith.constant 0 : index
    %c0_5 = arith.constant 0 : index
    %5 = vector.load %arg2[%c1_3, %c0_4, %c0_5] : memref<2x1x128xf32, #tpu.memory_space<vmem>>, vector<1x1x128xf32>
    %6 = vector.shape_cast %5 : vector<1x1x128xf32> to vector<1x128xf32>
    %7 = vector.broadcast %0 : f32 to vector<1x128xf32>
    %8 = arith.mulf %7, %4 : vector<1x128xf32>
    %9 = vector.broadcast %1 : f32 to vector<1x128xf32>
    %10 = arith.mulf %9, %6 : vector<1x128xf32>
    %11 = arith.addf %8, %10 : vector<1x128xf32>
    %12 = vector.broadcast %2 : f32 to vector<1x128xf32>
    %13 = arith.addf %11, %12 : vector<1x128xf32>
    %c0_6 = arith.constant 0 : index
    %c0_7 = arith.constant 0 : index
    %14 = vector.load %arg3[%c0_6, %c0_7] : memref<1x128xf32, #tpu.memory_space<vmem>>, vector<1x128xf32>
    tpu.vector_store %arg3[%c0_6, %c0_7], %13 {strides = array<i32>} : memref<1x128xf32, #tpu.memory_space<vmem>>, vector<1x128xf32>,
    return
  }
  func.func @transform_0(%arg0: i32) -> i32 {
    %c0_i32 = arith.constant 0 : i32
    %c0_i32_0 = arith.constant 0 : i32
    return %c0_i32 : i32
  }
  func.func @transform_1(%arg0: i32) -> (i32, i32, i32) {
    %c0_i32 = arith.constant 0 : i32
    %c0_i32_0 = arith.constant 0 : i32
    %c0_i32_1 = arith.constant 0 : i32
    return %c0_i32, %arg0, %c0_i32_0 : i32, i32, i32
  }
  func.func @transform_2(%arg0: i32) -> (i32, i32) {
    %c0_i32 = arith.constant 0 : i32
    %c0_i32_0 = arith.constant 0 : i32
    return %arg0, %c0_i32 : i32, i32
  }
}

</mosaic_0001>

<bundles_post_ra>
// kernel: lrm_forward.1
= control target key start
LH: loop header
LB: loop body
LE: loop exit
PB: predicated region body
PF: predicated region fallthrough
CT: control target
= control target key end

     0   :  { %7 = vsyncpa [#allocation3], 0  ;;  %s61_s12 = smov [#allocation2]   ;;  %s89_s0 = inlined_call_operand.vmem [shape: f32[3], index: 0, kind: input, shape index: {}]   ;;  %s90_s1 = inlined_call_operand.vmem [shape: f32[2,1,128], index: 1, kind: input, shape index: {}]   ;;  %s91_s2 = inlined_call_operand.vmem [shape: f32[1,128], index: 2, kind: output, shape index: {}]  }
   0x1   :  { %s13_s11 = sshll.u32 %s89_s0, 4  ;;  %s14_s11 = int_to_ptr.vmem [resolvable:$true] %s13_s11 }
   0x2   :  { %16 = dma.vmem_to_smem %s14_s11, 16, %s61_s12, [#allocation3]  }
   0x3   :  { %59 = dma.done.wait [#allocation3], 16  }
   0x4   :  { %60 = vsyncadd [#allocation3], 4294967280 }
   0x5   :  { %23 = sfence }
   0x6   :  { %s24_s13 = sld [smem:[#allocation2]]  ;;  %v27_v0 = vld [vmem:[%s90_s1] sm:$0x1]  ;;  %v45_v1 = vld [vmem:[%s90_s1 + $0x1] sm:$0x1] }
   0x7   :  { %s43_s14 = sld [smem:[#allocation2 + $0x1]] }
   0x8   :  { %s44_s15 = sld [smem:[#allocation2 + $0x2]] }
   0xc   :  { %v30_v2 = vstv %s24_s13 }
   0xd   :  { %v31_v3 = vmul.f32 %v30_v2, %v27_v0  ;;  %v32_v4 = vstv %s43_s14 }
   0xe   :  { %v33_v5 = vmul.f32 %v45_v1, %v32_v4  ;;  %v35_v6 = vstv %s44_s15 }
  0x10   :  { %v34_v7 = vadd.f32 %v33_v5, %v31_v3 }
  0x12   :  { %v36_v8 = vadd.f32 %v35_v6, %v34_v7 }
  0x14   :  { %37 = vst [vmem:[%s91_s2] sm:$0x1] %v36_v8 }
  0x15   :  { %42 = vsyncpa [#allocation3], 1 }

</bundles_post_ra>
